<compile_context>
chip_gen: v5e
topology: v5e:2x2
jax: 0.10.0
libtpu: 0.0.40
codegen_flags: <defaults>
</compile_context>

<pallas_src>
import functools

import jax
import jax.numpy as jnp
from jax import lax
from jax.experimental import pallas as pl
from jax.experimental.pallas import tpu as pltpu


# -----------------------------------------------------------------------------
# Main streaming kernel: per F-split partial accumulators of
#   hh = [eps*real ; (1-eps)*fake] @ W1   (2B, HID)  -- pre-activation halves
#   G  = W1^T W1                          (HID, HID) -- Gram matrix of W1
# Grid = (num_splits, steps_per_split); leading axis "parallel" (megacore),
# trailing axis "arbitrary" (F reduction, output blocks resident across it).
# -----------------------------------------------------------------------------
def _wlpo_stream_kernel(coef_ref, rf_ref, w1_ref, hh_out_ref, g_out_ref):
    k = pl.program_id(1)

    @pl.when(k == 0)
    def _():
        hh_out_ref[...] = jnp.zeros_like(hh_out_ref)
        g_out_ref[...] = jnp.zeros_like(g_out_ref)

    # Interpolation folded into a single per-row scale:
    #   rows [0, B)  of rf are real -> scaled by eps
    #   rows [B, 2B) of rf are fake -> scaled by (1 - eps)
    # The real/fake halves are summed later on the tiny (2B, HID) result, so
    # the big (2B, tile_f) tile is never sliced below the sublane tile.
    coef = coef_ref[...]                                        # (2B, 1) f32
    xh2 = (coef * rf_ref[...].astype(jnp.float32)).astype(w1_ref.dtype)

    w1_t = w1_ref[...]                                          # (tile_f, HID) bf16

    hh_out_ref[...] += jnp.dot(
        xh2, w1_t, preferred_element_type=jnp.float32)[None]
    # W1^T @ W1: contract dim 0 of both operands — MXU transposed-LHS path,
    # no explicit transpose of the (tile_f, HID) tile.
    g_out_ref[...] += lax.dot_general(
        w1_t, w1_t,
        dimension_numbers=(((0,), (0,)), ((), ())),
        preferred_element_type=jnp.float32)[None]


# -----------------------------------------------------------------------------
# Tiny epilogue kernel: combine split partials, finish the analytic gradient
# norm and the full scalar loss.
# -----------------------------------------------------------------------------
def _wlpo_finalize_kernel(lip_weight, neg_slope, batch,
                          pr_ref, pf_ref, b1_ref, w2_ref, hh_ref, g_ref,
                          out_ref):
    hh = jnp.sum(hh_ref[...], axis=0)                           # (2B, HID) f32
    h = hh[:batch] + hh[batch:] + b1_ref[...]                   # (B, HID)
    g = jnp.sum(g_ref[...], axis=0)                             # (HID, HID)

    grad_h = w2_ref[...] * jnp.where(h > 0, 1.0, neg_slope)     # (B, HID)
    t = jnp.dot(grad_h, g, preferred_element_type=jnp.float32)
    sq_norm = jnp.sum(t * grad_h, axis=1, keepdims=True)        # ||grad_x||^2
    norms = jnp.sqrt(jnp.maximum(sq_norm, 0.0))
    penalty = lip_weight * jnp.mean(norms)

    out_ref[0, 0] = -jnp.mean(pr_ref[...]) + jnp.mean(pf_ref[...]) + penalty


def _tpu_vmem_capacity_bytes():
    try:
        return int(getattr(pltpu.get_tpu_info(), "vmem_capacity_bytes",
                           64 * 1024 * 1024))
    except Exception:
        return 64 * 1024 * 1024


def _round_up(x, m):
    return ((x + m - 1) // m) * m


def wasserstein_lpo(pred_real, pred_fake, real_samples, fake_samples, eps,
                    w1, b1, w2, *,
                    lipschitz_penalty_weight=10.0, neg_slope=0.2,
                    tile_f=None, num_splits=2, compute_dtype=jnp.bfloat16):
    """Forward pass of WassersteinLPO. Returns a scalar f32 loss."""
    B = real_samples.shape[0]
    F = 1
    for d in real_samples.shape[1:]:
        F *= d
    HID = w1.shape[1]
    itemsize = jnp.dtype(compute_dtype).itemsize

    # ---- generation-aware VMEM limit and tile size --------------------------
    vmem_cap = _tpu_vmem_capacity_bytes()            # 128 MiB v5e/v6e, 64 MiB v7x
    vmem_limit = int(min(96 * 1024 * 1024, max(32 * 1024 * 1024, vmem_cap // 2)))
    if tile_f is None:
        budget = vmem_limit // 2                     # streamed, double-buffered tiles
        per_col = 2 * (2 * B + HID) * itemsize       # bytes per feature column (x2 buf)
        cap = max(128, min(16384, (budget // per_col) // 128 * 128))
        tile_f = min(cap, max(128, _round_up(pl.cdiv(F, num_splits), 128)))
    assert tile_f % 128 == 0, "tile_f must be a multiple of 128"

    steps_per_split = pl.cdiv(F, num_splits * tile_f)
    f_pad = num_splits * steps_per_split * tile_f

    # ---- wrapper-side layout plumbing (reshapes / zero pads / casts) --------
    real_flat = real_samples.reshape(B, F)
    fake_flat = fake_samples.reshape(B, F)
    rf = jnp.concatenate([real_flat, fake_flat], axis=0).astype(compute_dtype)
    w1_c = w1.astype(compute_dtype)
    if f_pad > F:
        rf = jnp.pad(rf, ((0, 0), (0, f_pad - F)))       # zero cols: no effect on h
        w1_c = jnp.pad(w1_c, ((0, f_pad - F), (0, 0)))   # zero rows: no effect on h, G

    eps2 = eps.reshape(B, 1).astype(jnp.float32)
    coef = jnp.concatenate([eps2, 1.0 - eps2], axis=0)   # (2B, 1)
    pr = pred_real.reshape(B, 1).astype(jnp.float32)
    pf = pred_fake.reshape(B, 1).astype(jnp.float32)
    b1_row = b1.reshape(1, HID).astype(jnp.float32)
    w2_row = w2.reshape(1, HID).astype(jnp.float32)

    cost = pl.CostEstimate(
        flops=int(2 * f_pad * HID * (HID + 2 * B)),
        transcendentals=0,
        bytes_accessed=int(f_pad * (2 * B + HID) * itemsize))

    sps = steps_per_split
    hh_part, g_part = pl.pallas_call(
        _wlpo_stream_kernel,
        out_shape=(jax.ShapeDtypeStruct((num_splits, 2 * B, HID), jnp.float32),
                   jax.ShapeDtypeStruct((num_splits, HID, HID), jnp.float32)),
        grid=(num_splits, steps_per_split),
        in_specs=[
            pl.BlockSpec((2 * B, 1), lambda s, k: (0, 0)),            # coef (resident)
            pl.BlockSpec((2 * B, tile_f), lambda s, k: (0, s * sps + k)),  # real|fake
            pl.BlockSpec((tile_f, HID), lambda s, k: (s * sps + k, 0)),    # W1 tile
        ],
        out_specs=(
            pl.BlockSpec((1, 2 * B, HID), lambda s, k: (s, 0, 0)),
            pl.BlockSpec((1, HID, HID), lambda s, k: (s, 0, 0)),
        ),
        compiler_params=pltpu.CompilerParams(
            dimension_semantics=("parallel", "arbitrary"),
            vmem_limit_bytes=vmem_limit),
        cost_estimate=cost,
    )(coef, rf, w1_c)

    fin = functools.partial(_wlpo_finalize_kernel,
                            float(lipschitz_penalty_weight), float(neg_slope), B)
    out = pl.pallas_call(
        fin,
        out_shape=jax.ShapeDtypeStruct((1, 1), jnp.float32),
        grid=(1,),
        in_specs=[
            pl.BlockSpec((B, 1), lambda i: (0, 0)),
            pl.BlockSpec((B, 1), lambda i: (0, 0)),
            pl.BlockSpec((1, HID), lambda i: (0, 0)),
            pl.BlockSpec((1, HID), lambda i: (0, 0)),
            pl.BlockSpec((num_splits, 2 * B, HID), lambda i: (0, 0, 0)),
            pl.BlockSpec((num_splits, HID, HID), lambda i: (0, 0, 0)),
        ],
        out_specs=pl.BlockSpec((1, 1), lambda i: (0, 0)),
    )(pr, pf, b1_row, w2_row, hh_part, g_part)
    return out[0, 0]


def _reference_loss(pred_real, pred_fake, real_samples, fake_samples, eps,
                    w1, b1, w2, lip_weight, neg_slope, compute_dtype):
    """Pure-JAX reference with the kernel's quantization points; the gradient
    is computed directly as grad_x = grad_h @ W1^T (validates the Gram trick)."""
    B = real_samples.shape[0]
    F = w1.shape[0]
    real32 = real_samples.reshape(B, F).astype(compute_dtype).astype(jnp.float32)
    fake32 = fake_samples.reshape(B, F).astype(compute_dtype).astype(jnp.float32)
    eps2 = eps.reshape(B, 1).astype(jnp.float32)
    a = (eps2 * real32).astype(compute_dtype)
    c = ((1.0 - eps2) * fake32).astype(compute_dtype)
    w1_c = w1.astype(compute_dtype)
    h = (jnp.dot(a, w1_c, preferred_element_type=jnp.float32)
         + jnp.dot(c, w1_c, preferred_element_type=jnp.float32)) + b1.reshape(1, -1)
    grad_h = w2.reshape(1, -1) * jnp.where(h > 0, 1.0, neg_slope)
    grad_x = jnp.dot(grad_h, w1_c.astype(jnp.float32).T)
    norms = jnp.sqrt(jnp.sum(grad_x * grad_x, axis=1))
    penalty = lip_weight * jnp.mean(norms)
    return -jnp.mean(pred_real) + jnp.mean(pred_fake) + penalty


if __name__ == "__main__":
    key = jax.random.PRNGKey(0)
    B, C, D, H, W = 2, 4, 4, 8, 8           # 5-D NCDHW samples, F = 1024
    F = C * D * H * W
    HID = 128                                # synthetic netD hidden width

    ks = jax.random.split(key, 7)
    pred_real = jax.random.normal(ks[0], (B, 1), jnp.float32)
    pred_fake = jax.random.normal(ks[1], (B, 1), jnp.float32)
    real_samples = jax.random.normal(ks[2], (B, C, D, H, W), jnp.float32)
    fake_samples = jax.random.normal(ks[3], (B, C, D, H, W), jnp.float32)
    # epsilon = torch.rand(B,1,1,1,1) -> deterministic uniform draw (glue, not kernel)
    eps = jax.random.uniform(ks[4], (B, 1, 1, 1, 1), jnp.float32)

    # deterministic synthetic discriminator parameters
    w1 = jax.random.normal(ks[5], (F, HID), jnp.float32) * (1.0 / jnp.sqrt(F))
    b1 = jnp.zeros((1, HID), jnp.float32)
    w2 = jax.random.normal(ks[6], (HID, 1), jnp.float32) * (1.0 / jnp.sqrt(HID))

    loss = wasserstein_lpo(pred_real, pred_fake, real_samples, fake_samples,
                           eps, w1, b1, w2,
                           lipschitz_penalty_weight=10.0,
                           tile_f=256, num_splits=2)   # 2 splits x 2 F-tiles each
    loss = jax.block_until_ready(loss)

    ref = _reference_loss(pred_real, pred_fake, real_samples, fake_samples,
                          eps, w1, b1, w2, 10.0, 0.2, jnp.bfloat16)
    ref = jax.block_until_ready(ref)

    assert jnp.isfinite(loss), "loss is not finite"
    assert jnp.allclose(loss, ref, rtol=2e-2, atol=2e-2), (loss, ref)
    print("KERNEL_OK")
</pallas_src>

<mosaic_0001>
module attributes {stable_mosaic.version = 11 : i64} {
  func.func @_wlpo_stream_kernel(%arg0: i32, %arg1: i32, %arg2: memref<4x1xf32, #tpu.memory_space<vmem>>, %arg3: memref<4x256xbf16, #tpu.memory_space<vmem>>, %arg4: memref<256x128xbf16, #tpu.memory_space<vmem>>, %arg5: memref<1x4x128xf32, #tpu.memory_space<vmem>>, %arg6: memref<1x128x128xf32, #tpu.memory_space<vmem>>) attributes {dimension_semantics = [#tpu.dimension_semantics<parallel>, #tpu.dimension_semantics<arbitrary>], iteration_bounds = array<i64: 2, 2>, scalar_prefetch = 0 : i64, scratch_operands = 0 : i64, tpu.core_type = #tpu.core_type<tc>, window_params = [{pipeline_mode = #tpu.pipeline_mode<synchronous>, transform_indices = @transform_0, window_bounds = array<i64: 4, 1>}, {transform_indices = @transform_1, window_bounds = array<i64: 4, 256>}, {transform_indices = @transform_2, window_bounds = array<i64: 256, 128>}, {transform_indices = @transform_3, window_bounds = array<i64: 1, 4, 128>}, {transform_indices = @transform_4, window_bounds = array<i64: 1, 128, 128>}]} {
    %c0_i32 = arith.constant 0 : i32
    %0 = arith.cmpi eq, %arg1, %c0_i32 : i32
    %1 = arith.extui %0 : i1 to i32
    %c0_i32_0 = arith.constant 0 : i32
    %2 = arith.cmpi ne, %1, %c0_i32_0 : i32
    scf.if %2 {
      %cst_19 = arith.constant 0.000000e+00 : f32
      %20 = vector.broadcast %cst_19 : f32 to vector<1x4x128xf32>
      %c0_20 = arith.constant 0 : index
      %c0_21 = arith.constant 0 : index
      %c0_22 = arith.constant 0 : index
      %21 = vector.load %arg5[%c0_20, %c0_21, %c0_22] : memref<1x4x128xf32, #tpu.memory_space<vmem>>, vector<1x4x128xf32>
      tpu.vector_store %arg5[%c0_20, %c0_21, %c0_22], %20 {strides = array<i32>} : memref<1x4x128xf32, #tpu.memory_space<vmem>>, vector<1x4x128xf32>,
      %cst_23 = arith.constant 0.000000e+00 : f32
      %22 = vector.broadcast %cst_23 : f32 to vector<1x128x128xf32>
      %c0_24 = arith.constant 0 : index
      %c0_25 = arith.constant 0 : index
      %c0_26 = arith.constant 0 : index
      %23 = vector.load %arg6[%c0_24, %c0_25, %c0_26] : memref<1x128x128xf32, #tpu.memory_space<vmem>>, vector<1x128x128xf32>
      tpu.vector_store %arg6[%c0_24, %c0_25, %c0_26], %22 {strides = array<i32>} : memref<1x128x128xf32, #tpu.memory_space<vmem>>, vector<1x128x128xf32>,
    } else {
    }
    %c0 = arith.constant 0 : index
    %c0_1 = arith.constant 0 : index
    %3 = vector.load %arg2[%c0, %c0_1] : memref<4x1xf32, #tpu.memory_space<vmem>>, vector<4x1xf32>
    %c0_2 = arith.constant 0 : index
    %c0_3 = arith.constant 0 : index
    %4 = vector.load %arg3[%c0_2, %c0_3] : memref<4x256xbf16, #tpu.memory_space<vmem>>, vector<4x256xbf16>
    %5 = arith.extf %4 : vector<4x256xbf16> to vector<4x256xf32>
    %6 = vector.broadcast %3 : vector<4x1xf32> to vector<4x256xf32>
    %7 = arith.mulf %6, %5 : vector<4x256xf32>
    %8 = arith.truncf %7 : vector<4x256xf32> to vector<4x256xbf16>
    %c0_4 = arith.constant 0 : index
    %c0_5 = arith.constant 0 : index
    %9 = vector.load %arg4[%c0_4, %c0_5] : memref<256x128xbf16, #tpu.memory_space<vmem>>, vector<256x128xbf16>
    %c0_6 = arith.constant 0 : index
    %c0_7 = arith.constant 0 : index
    %c0_8 = arith.constant 0 : index
    %10 = vector.load %arg5[%c0_6, %c0_7, %c0_8] : memref<1x4x128xf32, #tpu.memory_space<vmem>>, vector<1x4x128xf32>
    %cst = arith.constant dense<0.000000e+00> : vector<4x128xf32>
    %11 = tpu.matmul %8, %9, %cst {dimension_numbers = #tpu.dot_dimension_numbers<[1], [0], [0], [1], [0, 0, 1, 1], [], []>} : vector<4x256xbf16>, vector<256x128xbf16>, vector<4x128xf32> -> vector<4x128xf32>
    %12 = vector.shape_cast %11 : vector<4x128xf32> to vector<1x4x128xf32>
    %13 = arith.addf %10, %12 : vector<1x4x128xf32>
    %c0_9 = arith.constant 0 : index
    %c0_10 = arith.constant 0 : index
    %c0_11 = arith.constant 0 : index
    %14 = vector.load %arg5[%c0_9, %c0_10, %c0_11] : memref<1x4x128xf32, #tpu.memory_space<vmem>>, vector<1x4x128xf32>
    tpu.vector_store %arg5[%c0_9, %c0_10, %c0_11], %13 {strides = array<i32>} : memref<1x4x128xf32, #tpu.memory_space<vmem>>, vector<1x4x128xf32>,
    %c0_12 = arith.constant 0 : index
    %c0_13 = arith.constant 0 : index
    %c0_14 = arith.constant 0 : index
    %15 = vector.load %arg6[%c0_12, %c0_13, %c0_14] : memref<1x128x128xf32, #tpu.memory_space<vmem>>, vector<1x128x128xf32>
    %cst_15 = arith.constant dense<0.000000e+00> : vector<128x128xf32>
    %16 = tpu.matmul %9, %9, %cst_15 {dimension_numbers = #tpu.dot_dimension_numbers<[0], [0], [1], [1], [0, 1, 1, 1], [], []>} : vector<256x128xbf16>, vector<256x128xbf16>, vector<128x128xf32> -> vector<128x128xf32>
    %17 = vector.shape_cast %16 : vector<128x128xf32> to vector<1x128x128xf32>
    %18 = arith.addf %15, %17 : vector<1x128x128xf32>
    %c0_16 = arith.constant 0 : index
    %c0_17 = arith.constant 0 : index
    %c0_18 = arith.constant 0 : index
    %19 = vector.load %arg6[%c0_16, %c0_17, %c0_18] : memref<1x128x128xf32, #tpu.memory_space<vmem>>, vector<1x128x128xf32>
    tpu.vector_store %arg6[%c0_16, %c0_17, %c0_18], %18 {strides = array<i32>} : memref<1x128x128xf32, #tpu.memory_space<vmem>>, vector<1x128x128xf32>,
    return
  }
  func.func @transform_0(%arg0: i32, %arg1: i32) -> (i32, i32) {
    %c0_i32 = arith.constant 0 : i32
    %c0_i32_0 = arith.constant 0 : i32
    %c0_i32_1 = arith.constant 0 : i32
    return %c0_i32, %c0_i32_0 : i32, i32
  }
  func.func @transform_1(%arg0: i32, %arg1: i32) -> (i32, i32) {
    %c2_i32 = arith.constant 2 : i32
    %0 = arith.muli %arg0, %c2_i32 : i32
    %1 = arith.addi %0, %arg1 : i32
    %c0_i32 = arith.constant 0 : i32
    %c0_i32_0 = arith.constant 0 : i32
    return %c0_i32, %1 : i32, i32
  }
  func.func @transform_2(%arg0: i32, %arg1: i32) -> (i32, i32) {
    %c2_i32 = arith.constant 2 : i32
    %0 = arith.muli %arg0, %c2_i32 : i32
    %1 = arith.addi %0, %arg1 : i32
    %c0_i32 = arith.constant 0 : i32
    %c0_i32_0 = arith.constant 0 : i32
    return %1, %c0_i32 : i32, i32
  }
  func.func @transform_3(%arg0: i32, %arg1: i32) -> (i32, i32, i32) {
    %c0_i32 = arith.constant 0 : i32
    %c0_i32_0 = arith.constant 0 : i32
    %c0_i32_1 = arith.constant 0 : i32
    return %arg0, %c0_i32, %c0_i32_0 : i32, i32, i32
  }
  func.func @transform_4(%arg0: i32, %arg1: i32) -> (i32, i32, i32) {
    %c0_i32 = arith.constant 0 : i32
    %c0_i32_0 = arith.constant 0 : i32
    %c0_i32_1 = arith.constant 0 : i32
    return %arg0, %c0_i32, %c0_i32_0 : i32, i32, i32
  }
}

</mosaic_0001>

<bundles_post_ra>
// kernel: tpu_custom_call.1
= control target key start
LH: loop header
LB: loop body
LE: loop exit
PB: predicated region body
PF: predicated region fallthrough
CT: control target
= control target key end

     0   :  { %s1709_s0 = inlined_call_operand.vmem [shape: f32[4,1], index: 0, kind: input, shape index: {}]   ;;  %s1710_s1 = inlined_call_operand.hbm [shape: bf16[4,1024], index: 1, kind: input, shape index: {}]   ;;  %s1711_s2 = inlined_call_operand.hbm [shape: bf16[1024,128], index: 2, kind: input, shape index: {}]   ;;  %s1712_s3 = inlined_call_operand.hbm [shape: f32[2,4,128], index: 3, kind: output, shape index: {0}]   ;;  %s1713_s4 = inlined_call_operand.hbm [shape: f32[2,128,128], index: 4, kind: output, shape index: {1}]  }
   0x1   :  { %1719 = sst [smem:[#allocation21_spill]] %s1710_s1 }
   0x2   :  { %10 = vsyncpa [#allocation3], 0 }
   0x3   :  { %12 = vsyncpa [#allocation3 + $0x1], 0 }
   0x4   :  { %13 = vsyncpa [#allocation6], 0 }
   0x5   :  { %15 = vsyncpa [#allocation6 + $0x1], 0 }
   0x6   :  { %16 = vsyncpa [#allocation4], 0 }
   0x7   :  { %18 = vsyncpa [#allocation4 + $0x1], 0 }
   0x8   :  { %19 = vsyncpa [#allocation9], 0 }
   0x9   :  { %21 = vsyncpa [#allocation9 + $0x1], 0  ;;  %s1375_s15 = smov 0   ;;  %s1377_s16 = smov 0  }
   0xa   :  { %s1379_s17 = smov 0   ;;  %s1381_s18 = smov 0  }
   0xb   :  { %s1383_s19 = smov 0   ;;  %s1385_s20 = smov 0  }
   0xc   :  { %s1387_s21 = smov 0   ;;  %s1389_s22 = smov 0  }
   0xd   :  { %s1391_s23 = smov 0   ;;  %s1393_s24 = smov 0  }
   0xe   :  { %s1395_s25 = smov 0  }
   0xf LB: > { %1720 = sst [smem:[#allocation14_spill]] %s1322_s20  ;;  %s852_s26 = sadd.s32 4294967295, %s1342_s25   ;;  %s1342_s25 = sphi %s1395_s25, %s27_s25   ;;  %s1338_s24 = sphi %s1393_s24, %s1739_s24   ;;  %s1334_s23 = sphi %s1391_s23, %s1738_s23   ;;  %s1330_s22 = sphi %s1389_s22, %s1737_s22   ;;  %s1326_s21 = sphi %s1387_s21, %s1736_s21   ;;  %s1322_s20 = sphi %s1385_s20, %s1735_s20   ;;  %s1318_s19 = sphi %s1383_s19, %s1744_s19   ;;  %s1314_s18 = sphi %s1381_s18, %s1743_s18   ;;  %s1310_s17 = sphi %s1379_s17, %s1742_s17   ;;  %s1306_s16 = sphi %s1377_s16, %s1741_s16   ;;  %s1302_s15 = sphi %s1375_s15, %s1740_s15  }
  0x10   : > { %1721 = sst [smem:[#allocation15_spill]] %s1334_s23  ;;  %s853_s27 = sadd.s32 4294967294, %s1342_s25  }
  0x11   : > { %1722 = sst [smem:[#allocation16_spill]] %s1338_s24  ;;  %s36_s28 = sadd.s32 1, %s1334_s23 }
  0x12   : > { %s39_s29 = sadd.s32 1, %s1338_s24  ;;  %p37_p0 = scmp.ge.s32.totalorder %s36_s28, 2 }
  0x13   : > { %s854_s30 = sshll.u32 %s1338_s24, 1  ;;  %s71_s6 = sadd.s32 1, %s1322_s20 }
  0x14   : > { %s1434_s5 = sadd.s32 %s1334_s23, %s854_s30  ;;  %s1746_s28 = smov (%p37_p0, %s36_s28), 0 }
  0x15   : > { %1723 = sst [smem:[#allocation17_spill]] %s1746_s28  ;;  %s1748_s29 = smov (!%p37_p0, %s39_s29), %s1338_s24 }
  0x16   : > { %p78_p1 = scmp.ne.s32.totalorder %s1322_s20, %s1318_s19  ;;  %p79_p2 = scmp.eq.s32.totalorder %s1342_s25, 0 }
  0x17   : > { %p41_p3 = scmp.ge.s32.totalorder %s1748_s29, 2  ;;  %p84_p4 = scmp.ne.s32.totalorder %s1318_s19, %s1314_s18 }
  0x18   : > { %p1444_p5 = por %p79_p2, %p78_p1  ;;  %p85_p6 = scmp.eq.s32.totalorder %s852_s26, 0 }
  0x19   : > { %s1750_s29 = smov (%p41_p3, %s1748_s29), 0  ;;  %s127_s9 = sadd.s32 1, %s1310_s17 }
  0x1a   : > { %1725 = sst [smem:[#allocation18_spill]] %s1750_s29  ;;  %p1450_p7 = por %p85_p6, %p84_p4 }
  0x1b   : > { %s855_s10 = sshll.u32 %s1750_s29, 1  ;;  %s124_s11 = ssub.s32 %s1338_s24, %s1750_s29 }
  0x1c   : > { %s67_s12 = sadd.s32 %s855_s10, %s1746_s28  ;;  %p125_p8 = scmp.eq.s32.totalorder %s124_s11, 0 }
  0x1d   : > { %s68_s13 = ssub.s32 %s1434_s5, %s67_s12  ;;  %p137_p9 = scmp.ne.s32.totalorder %s1310_s17, %s1306_s16 }
  0x1e   : > { %p69_p10 = scmp.eq.s32.totalorder %s68_s13, 0  ;;  %p138_p11 = scmp.eq.s32.totalorder %s852_s26, 3 }
  0x1f   : > { %s1463_s14 = scalar_select %p125_p8, %s1310_s17, %s127_s9  }
  0x20   : > { %s1466_s18 = scalar_select %p69_p10, %s1322_s20, %s71_s6  }
  0x21   : > { %1727 = sst [smem:[#allocation19_spill]] %s1463_s14  ;;  %p1468_p12 = por %p138_p11, %p137_p9 }
  0x22   : > { %1728 = sst [smem:[#allocation20_spill]] %s1466_s18  ;;  %p143_p13 = scmp.ne.s32.totalorder %s1306_s16, %s1302_s15 }
  0x23   : > { %p144_p0 = scmp.eq.s32.totalorder %s853_s27, 3  ;;  %p1002_p1 = scmp.lt.s32.totalorder %s1342_s25, 4 }
  0x24   : > { %s1478_s10 = sand.u32 1, %s1322_s20   ;;  %s945_s9 = sshll.u32 %s1434_s5, 2 }
  0x25   : > { %p1480_p2 = por %p144_p0, %p143_p13  ;;  %s860_s6 = sshll.u32 %s1478_s10, 2 }
  0x26   : > { %s1731_s1 = sld [smem:[#allocation21_spill]]  ;;  %s197_s28 = scalar_lea.vmem [#allocation2], %s860_s6 }
  0x27   : > { %s208_s24 = sshll.u32 %s197_s28, 4  ;;  %p1491_p3 = pnand %p1002_p1, %p1444_p5  ;;  %s209_s24 = int_to_ptr.vmem [resolvable:$true] %s208_s24 }
  0x28   : > { %s946_s23 = sshll.u32 %s1434_s5, 7  ;;  %p868_p4 = scmp.ge.s32.totalorder %s1342_s25, 1 }
  0x29   : > { %p237_p6 = scmp.lt.s32.totalorder %s1342_s25, 5  ;;  %s194_s18 = scalar_lea.sflag [#allocation3], %s1478_s10 }
  0x2a   : > { %s226_s11 = scalar_lea.hbm %s1711_s2, %s946_s23  ;;  %s1344_s20 = smov 64  }
  0x2b   : > { %p238_p8 = pnand %p868_p4, %p237_p6  ;;  %s227_s12 = sshll.u32 %s226_s11, 4  ;;  %s228_s12 = int_to_ptr.hbm [resolvable:$true] %s227_s12 }
  0x2c   : > { %s204_s13 = scalar_lea.hbm %s1731_s1, %s945_s9  ;;  %s864_s9 = sshll.u32 %s1478_s10, 7 }
  0x2d   : > { %s206_s29 = sshll.u32 %s204_s13, 4  ;;  %s219_s7 = scalar_lea.vmem [#allocation5], %s864_s9  ;;  %s207_s29 = int_to_ptr.hbm [resolvable:$true] %s206_s29 }
  0x2e   : > { %991 = dma.hbm_to_vmem [thread:$0]  (!%p1491_p3), %s207_s29, 64, %s209_s24, %s194_s18  }
  0x2f   : > { %s229_s13 = sshll.u32 %s219_s7, 4  ;;  %s216_s1 = scalar_lea.sflag [#allocation6], %s1478_s10  ;;  %s230_s13 = int_to_ptr.vmem [resolvable:$true] %s229_s13 }
  0x30   : > { %s1345_s5 = smov 4   ;;  %241 = sbr.rel (%p238_p8) target bundleno = 526 (0x20e), region = 32 }
  0x31   : > { %994 = dma.hbm_to_vmem [thread:$0]  (!%p1491_p3), %s228_s12, 2048, %s230_s13, %s216_s1, %s1344_s20, %s1344_s20, %s1345_s5  }
  0x32   : > { %s243_s24 = sand.u32 (!%p238_p8), 1, %s1318_s19  }
  0x33   : > { %s869_s29 = sshll.u32 (!%p238_p8), %s243_s24, 2  ;;  %s244_s18 = scalar_lea.sflag (!%p238_p8), [#allocation3], %s243_s24 }
  0x34   : > { %s1509_s14 = scalar_lea.vmem (!%p238_p8), [#allocation2], %s869_s29 }
  0x35   : > { %1285 = dma.done.wait (%p1450_p7), %s244_s18, 64  }
  0x36   : > { %1287 = vsyncadd (%p1450_p7), %s244_s18, 4294967232  ;;  %s870_s23 = sshll.u32 %s243_s24, 7  ;;  %s254_s10 = scalar_lea.sflag [#allocation6], %s243_s24 }
  0x37   : > { %s1515_s9 = scalar_lea.vmem [#allocation5], %s870_s23 }
  0x38   : > { %1289 = dma.done.wait (%p1450_p7), %s254_s10, 2048  }
  0x39   : > { %1291 = vsyncadd (%p1450_p7), %s254_s10, 4294965248  ;;  %s1522_s1 = sand.u32 1, %s1306_s16   ;;  %p873_p5 = scmp.ne.s32.totalorder %s1326_s21, 0 }
  0x3a   : > { %s871_s20 = sshll.u32 %s1522_s1, 2  ;;  %s872_s27 = sshll.u32 %s1522_s1, 7 }
  0x3b   : > { %s1526_s6 = scalar_lea.vmem [#allocation7], %s871_s20  ;;  %s1528_s28 = scalar_lea.vmem [#allocation8], %s872_s27 }
  0x3c   : > { %302 = sbr.rel (%p873_p5) target bundleno = 83 (0x53), region = 44 }
  0x41   : > { %v1346_v0 = vmov 0.0  }
  0x42   : > { %303 = vst [vmem:[%s1526_s6] sm:$0xf] %v1346_v0 }
  0x43   : > { %304 = vst [vmem:[%s1528_s28] sm:$0xff] %v1346_v0 }
  0x44   : > { %305 = vst [vmem:[%s1528_s28 + $0x8] sm:$0xff] %v1346_v0 }
  0x45   : > { %306 = vst [vmem:[%s1528_s28 + $0x10] sm:$0xff] %v1346_v0 }
  0x46   : > { %307 = vst [vmem:[%s1528_s28 + $0x18] sm:$0xff] %v1346_v0 }
  0x47   : > { %308 = vst [vmem:[%s1528_s28 + $0x20] sm:$0xff] %v1346_v0 }
  0x48   : > { %309 = vst [vmem:[%s1528_s28 + $0x28] sm:$0xff] %v1346_v0 }
  0x49   : > { %310 = vst [vmem:[%s1528_s28 + $0x30] sm:$0xff] %v1346_v0 }
  0x4a   : > { %311 = vst [vmem:[%s1528_s28 + $0x38] sm:$0xff] %v1346_v0 }
  0x4b   : > { %312 = vst [vmem:[%s1528_s28 + $0x40] sm:$0xff] %v1346_v0 }
  0x4c   : > { %313 = vst [vmem:[%s1528_s28 + $0x48] sm:$0xff] %v1346_v0 }
  0x4d   : > { %314 = vst [vmem:[%s1528_s28 + $0x50] sm:$0xff] %v1346_v0 }
  0x4e   : > { %315 = vst [vmem:[%s1528_s28 + $0x58] sm:$0xff] %v1346_v0 }
  0x4f   : > { %316 = vst [vmem:[%s1528_s28 + $0x60] sm:$0xff] %v1346_v0 }
  0x50   : > { %317 = vst [vmem:[%s1528_s28 + $0x68] sm:$0xff] %v1346_v0 }
  0x51   : > { %318 = vst [vmem:[%s1528_s28 + $0x70] sm:$0xff] %v1346_v0 }
  0x52   : > { %319 = vst [vmem:[%s1528_s28 + $0x78] sm:$0xff] %v1346_v0 }
  0x53 PF: > { %v1549_v1 = vld [vmem:[%s1515_s9] sm:$0xff]  ;;  %v320_v3 = vld [vmem:[%s1709_s0] sm:$0xf]  ;;  %v1347_v4 = vmov 0   ;;  %v1561_v5 = vld [vmem:[%s1515_s9 + $0x8] sm:$0xff]  ;;  %s691_s13 = sshll.u32 %s1526_s6, 4  ;;  %s692_s13 = int_to_ptr.vmem [resolvable:$true] %s691_s13 }
  0x54   : > { %v1552_v2 = vld [vmem:[%s1515_s9 + $0x40] sm:$0xff]  ;;  %1122 = vset.pattern.permute.xlu1 %v1347_v4  ;;  %v1564_v6 = vld [vmem:[%s1515_s9 + $0x48] sm:$0xff]  ;;  %v1569_v7 = vld [vmem:[%s1515_s9 + $0x10] sm:$0xff]  ;;  %s674_s24 = scalar_lea.sflag [#allocation4], %s1522_s1 }
  0x55   : > { %1098 = vxpose.binary.xlu0.c.b16.start [1/16] %v1552_v2, %v1549_v1, 128  ;;  %v1572_v8 = vld [vmem:[%s1515_s9 + $0x50] sm:$0xff]  ;;  %v950_v9 = vld [vmem:[%s1515_s9 + $0x18] sm:$0xff]  ;;  %v951_v11 = vld [vmem:[%s1515_s9 + $0x20] sm:$0xff] }
  0x56   : > { %325 = vperm.xlu1 %1122, %v320_v3   ;;  %v958_v10 = vld [vmem:[%s1515_s9 + $0x58] sm:$0xff]  ;;  %v959_v12 = vld [vmem:[%s1515_s9 + $0x60] sm:$0xff]  ;;  %v953_v15 = vld [vmem:[%s1515_s9 + $0x30] sm:$0xff] }
  0x57   : > { %v954_v13 = vld [vmem:[%s1515_s9 + $0x38] sm:$0xff]  ;;  %v961_v16 = vld [vmem:[%s1515_s9 + $0x70] sm:$0xff]  ;;  %v952_v17 = vld [vmem:[%s1515_s9 + $0x28] sm:$0xff] }
  0x58   : > { %v962_v14 = vld [vmem:[%s1515_s9 + $0x78] sm:$0xff]  ;;  %467 = vmatpush.bf16.msra.mxu0 %v954_v13  ;;  %964 = vmatpush.bf16.msra.mxu2 %v954_v13  ;;  %v960_v18 = vld [vmem:[%s1515_s9 + $0x68] sm:$0xff]  ;;  %v370_v40 = vld [vmem:[%s1526_s6] sm:$0xf]  ;;  %s1204_s9 = scalar_lea.hbm %s1712_s3, 8 }
  0x59   : > { %480 = vmatpush.bf16.msra.mxu1 %v962_v14  ;;  %972 = vmatpush.bf16.msra.mxu3 %v962_v14  ;;  %v321_v19 = vld [vmem:[%s1509_s14] sm:$0xf]  ;;  %v495_v53 = vld [vmem:[%s1528_s28] sm:$0xff]  ;;  %s940_s14 = sshll.u32 %s1330_s22, 2 }
  0x5a   : > { %v322_v20 = vunpack.c.l.bf16 %v321_v19  ;;  %s689_s7 = scalar_lea.hbm %s1712_s3, %s940_s14 }
  0x5b   : > { %s693_s5 = sshll.u32 %s689_s7, 4  ;;  %s694_s5 = int_to_ptr.hbm [resolvable:$true] %s693_s5 }
  0x5c   : > { %468 = vmatpush.bf16.msra.mxu0 %v953_v15  ;;  %965 = vmatpush.bf16.msra.mxu2 %v953_v15  ;;  %329 = vst [vmem:[#allocation1] ss:$2 sm:$0xff] %v322_v20  ;;  %s1198_s29 = sshra.s32 %s694_s5, 4  ;;  %s1199_s29 = int_to_ptr.hbm [resolvable:$true] %s1198_s29 }
  0x5d   : > { %481 = vmatpush.bf16.msra.mxu1 %v961_v16  ;;  %973 = vmatpush.bf16.msra.mxu3 %v961_v16  ;;  %s1200_s18 = scalar_lea.hbm %s1199_s29, 4  ;;  %p1205_p11 = scmp.lt.s32.totalorder %s1199_s29, %s1712_s3 }
  0x5e   : > { %p1201_p7 = scmp.ne.s32.totalorder %s1199_s29, %s1200_s18  ;;  %p1206_p13 = scmp.lt.s32.totalorder %s1204_s9, %s1200_s18 }
  0x60   : > { %469 = vmatpush.bf16.msra.mxu0 %v952_v17  ;;  %966 = vmatpush.bf16.msra.mxu2 %v952_v17  ;;  %p1202_p9 = pnand %p1201_p7, %p1468_p12  ;;  %p1207_p0 = por %p1206_p13, %p1205_p11 }
  0x61   : > { %482 = vmatpush.bf16.msra.mxu1 %v960_v18  ;;  %974 = vmatpush.bf16.msra.mxu3 %v960_v18 }
  0x62   : > { %p1203_p10 = pneg %p1202_p9 }
  0x63   : > { %v330_v21 = vld.sshfl [vmem:[#allocation1] sm:$0xff pattern:$0x75316420]  ;;  %v331_v22 = vld.sshfl [vmem:[#allocation1 + $0x8] sm:$0xff pattern:$0x75316420] }
  0x64   : > { %470 = vmatpush.bf16.msra.mxu0 %v951_v11  ;;  %967 = vmatpush.bf16.msra.mxu2 %v951_v11  ;;  %p1208_p1 = pnand %p1207_p0, %p1203_p10 }
  0x65   : > { %1099 = vxpose.binary.xlu0.c.b16.cont [2/16] %v1564_v6, %v1561_v5, 128 }
  0x66   : > { %483 = vmatpush.bf16.msra.mxu1 %v959_v12  ;;  %975 = vmatpush.bf16.msra.mxu3 %v959_v12 }
  0x68   : > { %471 = vmatpush.bf16.msra.mxu0 %v950_v9  ;;  %968 = vmatpush.bf16.msra.mxu2 %v950_v9 }
  0x6a   : > { %484 = vmatpush.bf16.msra.mxu1 %v958_v10  ;;  %976 = vmatpush.bf16.msra.mxu3 %v958_v10 }
  0x6c   : > { %472 = vmatpush.bf16.msra.mxu0 %v1569_v7  ;;  %969 = vmatpush.bf16.msra.mxu2 %v1569_v7 }
  0x6e   : > { %485 = vmatpush.bf16.msra.mxu1 %v1572_v8  ;;  %977 = vmatpush.bf16.msra.mxu3 %v1572_v8 }
  0x70   : > { %473 = vmatpush.bf16.msra.mxu0 %v1561_v5  ;;  %970 = vmatpush.bf16.msra.mxu2 %v1561_v5 }
  0x72   : > { %486 = vmatpush.bf16.msra.mxu1 %v1564_v6  ;;  %978 = vmatpush.bf16.msra.mxu3 %v1564_v6 }
  0x74   : > { %474 = vmatpush.bf16.msra.mxu0 %v1549_v1  ;;  %971 = vmatpush.bf16.msra.mxu2 %v1549_v1 }
  0x75   : > { %1100 = vxpose.binary.xlu0.c.b16.cont [3/16] %v1572_v8, %v1569_v7, 128 }
  0x76   : > { %487 = vmatpush.bf16.msra.mxu1 %v1552_v2  ;;  %979 = vmatpush.bf16.msra.mxu3 %v1552_v2 }
  0x78   : > { %543 = vmatpush.bf16.msrb.mxu0 %v954_v13 }
  0x7a   : > { %592 = vmatpush.bf16.msrb.mxu1 %v962_v14 }
  0x7c   : > { %544 = vmatpush.bf16.msrb.mxu0 %v953_v15 }
  0x7e   : > { %593 = vmatpush.bf16.msrb.mxu1 %v961_v16 }
  0x80   : > { %545 = vmatpush.bf16.msrb.mxu0 %v952_v17 }
  0x82   : > { %594 = vmatpush.bf16.msrb.mxu1 %v960_v18 }
  0x84   : > { %546 = vmatpush.bf16.msrb.mxu0 %v951_v11 }
  0x85   : > { %1101 = vxpose.binary.xlu0.c.b16.cont [4/16] %v958_v10, %v950_v9, 128 }
  0x86   : > { %595 = vmatpush.bf16.msrb.mxu1 %v959_v12 }
  0x88   : > { %547 = vmatpush.bf16.msrb.mxu0 %v950_v9 }
  0x8a   : > { %596 = vmatpush.bf16.msrb.mxu1 %v958_v10 }
  0x8c   : > { %548 = vmatpush.bf16.msrb.mxu0 %v1569_v7 }
  0x8e   : > { %597 = vmatpush.bf16.msrb.mxu1 %v1572_v8 }
  0x90   : > { %549 = vmatpush.bf16.msrb.mxu0 %v1561_v5 }
  0x92   : > { %598 = vmatpush.bf16.msrb.mxu1 %v1564_v6 }
  0x94   : > { %550 = vmatpush.bf16.msrb.mxu0 %v1549_v1 }
  0x95   : > { %1102 = vxpose.binary.xlu0.c.b16.cont [5/16] %v959_v12, %v951_v11, 128 }
  0x96   : > { %599 = vmatpush.bf16.msrb.mxu1 %v1552_v2 }
  0xa5   : > { %1103 = vxpose.binary.xlu0.c.b16.cont [6/16] %v960_v18, %v952_v17, 128 }
  0xb5   : > { %1104 = vxpose.binary.xlu0.c.b16.cont [7/16] %v961_v16, %v953_v15, 128 }
  0xc5   : > { %1105 = vxpose.binary.xlu0.c.b16.end [8/16] %v962_v14, %v954_v13, 128 }
  0xc8   : > { %v326_v23 = vpop.permute.xlu1 %325 }
  0xc9   : > { %v334_v24 = vmul.f32 %v330_v21, %v326_v23  ;;  %v335_v25 = vmul.f32 %v331_v22, %v326_v23 }
  0xcb   : > { %v336_v26 = vpack.c.bf16 %v334_v24, %v334_v24  ;;  %v337_v27 = vpack.c.bf16 %v335_v25, %v335_v25 }
  0xcd   : > { %475 = vmatmul.bf16.vlgmr.msra.gmra.mxu0 %v336_v26  ;;  %488 = vmatmul.bf16.vlgmr.msra.gmra.mxu1 %v337_v27 }
 0x101   : > { %v1106_v28 = vpop.trf.xlu0 }
 0x102   : > { %551 = vmatmul.bf16.vlgmr.msrb.gmra.mxu0 %v1106_v28 }
 0x109   : > { %v1107_v29 = vpop.trf.xlu0 }
 0x10a   : > { %600 = vmatmul.bf16.vlgmr.msrb.gmra.mxu1 %v1107_v29 }
 0x111   : > { %v1108_v30 = vpop.trf.xlu0 }
 0x112   : > { %556 = vmatmul.bf16.gmra.mxu0 %v1108_v30 }
 0x119   : > { %v1109_v31 = vpop.trf.xlu0 }
 0x11a   : > { %605 = vmatmul.bf16.gmra.mxu1 %v1109_v31 }
 0x121   : > { %v1110_v32 = vpop.trf.xlu0 }
 0x122   : > { %561 = vmatmul.bf16.gmra.mxu0 %v1110_v32 }
 0x129   : > { %v1111_v33 = vpop.trf.xlu0 }
 0x12a   : > { %610 = vmatmul.bf16.gmra.mxu1 %v1111_v33 }
 0x12c   : > { %1123 = vset.pattern.permute.xlu0 %v1347_v4 }
 0x131   : > { %v1112_v34 = vpop.trf.xlu0 }
 0x132   : > { %566 = vmatmul.bf16.vlgmr.msra.gmra.mxu2 %v1112_v34 }
 0x139   : > { %v1113_v35 = vpop.trf.xlu0 }
 0x13a   : > { %615 = vmatmul.bf16.vlgmr.msra.gmra.mxu3 %v1113_v35 }
 0x141   : > { %v1114_v36 = vpop.trf.xlu0 }
 0x142   : > { %571 = vmatmul.bf16.gmra.mxu2 %v1114_v36 }
 0x149   : > { %v1115_v37 = vpop.trf.xlu0 }
 0x14a   : > { %620 = vmatmul.bf16.gmra.mxu3 %v1115_v37  ;;  %v476_v38 = vpop.f32.mrf.mxu0  ;;  %v489_v41 = vpop.f32.mrf.mxu1 }
 0x14b   : > { %v490_v43 = vadd.f32 %v489_v41, %v476_v38 }
 0x14d   : > { %v493_v44 = vadd.f32 %v490_v43, %v370_v40 }
 0x14f   : > { %494 = vst [vmem:[%s1526_s6] sm:$0xf] %v493_v44 }
 0x151   : > { %v1116_v39 = vpop.trf.xlu0 }
 0x152   : > { %576 = vmatmul.bf16.gmra.mxu2 %v1116_v39  ;;  %v478_v42 = vpop.f32.mrf.mxu0  ;;  %v491_v46 = vpop.f32.mrf.mxu1 }
 0x159   : > { %v1117_v45 = vpop.trf.xlu0 }
 0x15a   : > { %625 = vmatmul.bf16.gmra.mxu3 %v1117_v45 }
 0x161   : > { %v1118_v47 = vpop.trf.xlu0 }
 0x162   : > { %581 = vmatmul.bf16.gmra.mxu2 %v1118_v47 }
 0x169   : > { %v1119_v48 = vpop.trf.xlu0 }
 0x16a   : > { %630 = vmatmul.bf16.gmra.mxu3 %v1119_v48 }
 0x171   : > { %v1120_v49 = vpop.trf.xlu0 }
 0x172   : > { %586 = vmatmul.bf16.gmra.mxu2 %v1120_v49 }
 0x179   : > { %v1121_v50 = vpop.trf.xlu0 }
 0x17a   : > { %635 = vmatmul.bf16.gmra.mxu3 %v1121_v50 }
 0x17f   : > { %v552_v51 = vpop.f32.mrf.mxu0 }
 0x187   : > { %v554_v52 = vpop.f32.mrf.mxu0  ;;  %v601_v54 = vpop.f32.mrf.mxu1 }
 0x188   : > { %v602_v55 = vadd.f32 %v601_v54, %v552_v51 }
 0x18a   : > { %v641_v56 = vadd.f32 %v602_v55, %v495_v53 }
 0x18c   : > { %657 = vst [vmem:[%s1528_s28] sm:$0xff] %v641_v56 }
 0x18d   : > { %1211 = shalt.err (!%p1208_p1)
}
 0x18e   : > { %984 = dma.vmem_to_hbm [thread:$0]  (%p1468_p12), %s692_s13, 64, %s694_s5, %s674_s24   ;;  %v496_v57 = vld [vmem:[%s1528_s28 + $0x8] sm:$0xff]  ;;  %v497_v62 = vld [vmem:[%s1528_s28 + $0x10] sm:$0xff]  ;;  %v498_v3 = vld [vmem:[%s1528_s28 + $0x18] sm:$0xff] }
 0x18f   : > { %v603_v58 = vpop.f32.mrf.mxu1  ;;  %v557_v60 = vpop.f32.mrf.mxu0  ;;  %v499_v8 = vld [vmem:[%s1528_s28 + $0x20] sm:$0xff]  ;;  %v500_v13 = vld [vmem:[%s1528_s28 + $0x28] sm:$0xff]  ;;  %v501_v19 = vld [vmem:[%s1528_s28 + $0x30] sm:$0xff]  ;;  %s963_s6 = sshll.u32 %s1330_s22, 7  ;;  %s705_s11 = sshll.u32 %s1528_s28, 4  ;;  %s706_s11 = int_to_ptr.vmem [resolvable:$true] %s705_s11 }
 0x190   : > { %v604_v59 = vadd.f32 %v603_v58, %v554_v52  ;;  %v502_v24 = vld [vmem:[%s1528_s28 + $0x38] sm:$0xff]  ;;  %v503_v29 = vld [vmem:[%s1528_s28 + $0x40] sm:$0xff]  ;;  %v504_v34 = vld [vmem:[%s1528_s28 + $0x48] sm:$0xff]  ;;  %s704_s14 = scalar_lea.hbm %s1713_s4, %s963_s6  ;;  %s679_s7 = scalar_lea.sflag [#allocation9], %s1522_s1 }
 0x191   : > { %v505_v39 = vld [vmem:[%s1528_s28 + $0x50] sm:$0xff]  ;;  %v506_v43 = vld [vmem:[%s1528_s28 + $0x58] sm:$0xff]  ;;  %v507_v48 = vld [vmem:[%s1528_s28 + $0x60] sm:$0xff]  ;;  %s707_s12 = sshll.u32 %s704_s14, 4  ;;  %s1232_s29 = scalar_lea.hbm %s1713_s4, 256  ;;  %s708_s12 = int_to_ptr.hbm [resolvable:$true] %s707_s12 }
 0x192   : > { %v642_v61 = vadd.f32 %v604_v59, %v496_v57  ;;  %v508_v53 = vld [vmem:[%s1528_s28 + $0x68] sm:$0xff]  ;;  %v509_v58 = vld [vmem:[%s1528_s28 + $0x70] sm:$0xff]  ;;  %s1226_s13 = sshra.s32 %s708_s12, 4  ;;  %s1227_s13 = int_to_ptr.hbm [resolvable:$true] %s1226_s13 }
 0x193   : > { %s1228_s22 = scalar_lea.hbm %s1227_s13, 128  ;;  %p1233_p8 = scmp.lt.s32.totalorder %s1227_s13, %s1713_s4 }
 0x194   : > { %658 = vst [vmem:[%s1528_s28 + $0x8] sm:$0xff] %v642_v61  ;;  %p1229_p3 = scmp.ne.s32.totalorder %s1227_s13, %s1228_s22  ;;  %p1234_p5 = scmp.lt.s32.totalorder %s1232_s29, %s1228_s22 }
 0x196   : > { %p1230_p4 = pnand %p1229_p3, %p1468_p12  ;;  %p1235_p7 = por %p1234_p5, %p1233_p8 }
 0x197   : > { %v606_v63 = vpop.f32.mrf.mxu1  ;;  %v559_v2 = vpop.f32.mrf.mxu0 }
 0x198   : > { %v607_v0 = vadd.f32 %v606_v63, %v557_v60  ;;  %v510_v63 = vld [vmem:[%s1528_s28 + $0x78] sm:$0xff]  ;;  %p1231_p6 = pneg %p1230_p4 }
 0x19a   : > { %v643_v1 = vadd.f32 %v607_v0, %v497_v62  ;;  %p1236_p9 = pnand %p1235_p7, %p1231_p6 }
 0x19c   : > { %659 = vst [vmem:[%s1528_s28 + $0x10] sm:$0xff] %v643_v1 }
 0x19f   : > { %v608_v4 = vpop.f32.mrf.mxu1  ;;  %v562_v7 = vpop.f32.mrf.mxu0 }
 0x1a0   : > { %v609_v5 = vadd.f32 %v608_v4, %v559_v2 }
 0x1a2   : > { %v644_v6 = vadd.f32 %v609_v5, %v498_v3 }
 0x1a4   : > { %660 = vst [vmem:[%s1528_s28 + $0x18] sm:$0xff] %v644_v6 }
 0x1a7   : > { %v611_v9 = vpop.f32.mrf.mxu1  ;;  %v564_v12 = vpop.f32.mrf.mxu0 }
 0x1a8   : > { %v612_v10 = vadd.f32 %v611_v9, %v562_v7 }
 0x1aa   : > { %v645_v11 = vadd.f32 %v612_v10, %v499_v8 }
 0x1ac   : > { %661 = vst [vmem:[%s1528_s28 + $0x20] sm:$0xff] %v645_v11 }
 0x1af   : > { %v613_v14 = vpop.f32.mrf.mxu1 }
 0x1b0   : > { %v614_v15 = vadd.f32 %v613_v14, %v564_v12 }
 0x1b2   : > { %v646_v16 = vadd.f32 %v614_v15, %v500_v13 }
 0x1b4   : > { %662 = vst [vmem:[%s1528_s28 + $0x28] sm:$0xff] %v646_v16 }
 0x1b5   : > { %v567_v17 = vpop.f32.mrf.mxu2 }
 0x1bd   : > { %v569_v18 = vpop.f32.mrf.mxu2  ;;  %v616_v20 = vpop.f32.mrf.mxu3 }
 0x1be   : > { %v617_v21 = vadd.f32 %v616_v20, %v567_v17 }
 0x1c0   : > { %v647_v22 = vadd.f32 %v617_v21, %v501_v19 }
 0x1c2   : > { %663 = vst [vmem:[%s1528_s28 + $0x30] sm:$0xff] %v647_v22 }
 0x1c5   : > { %v572_v23 = vpop.f32.mrf.mxu2  ;;  %v618_v25 = vpop.f32.mrf.mxu3 }
 0x1c6   : > { %v619_v26 = vadd.f32 %v618_v25, %v569_v18 }
 0x1c8   : > { %v648_v27 = vadd.f32 %v619_v26, %v502_v24 }
 0x1ca   : > { %664 = vst [vmem:[%s1528_s28 + $0x38] sm:$0xff] %v648_v27 }
 0x1cd   : > { %v574_v28 = vpop.f32.mrf.mxu2  ;;  %v621_v30 = vpop.f32.mrf.mxu3 }
 0x1ce   : > { %v622_v31 = vadd.f32 %v621_v30, %v572_v23 }
 0x1d0   : > { %v649_v32 = vadd.f32 %v622_v31, %v503_v29 }
 0x1d2   : > { %665 = vst [vmem:[%s1528_s28 + $0x40] sm:$0xff] %v649_v32 }
 0x1d5   : > { %v577_v33 = vpop.f32.mrf.mxu2  ;;  %v623_v35 = vpop.f32.mrf.mxu3 }
 0x1d6   : > { %v624_v36 = vadd.f32 %v623_v35, %v574_v28 }
 0x1d8   : > { %v650_v37 = vadd.f32 %v624_v36, %v504_v34 }
 0x1da   : > { %666 = vst [vmem:[%s1528_s28 + $0x48] sm:$0xff] %v650_v37 }
 0x1dd   : > { %v579_v38 = vpop.f32.mrf.mxu2  ;;  %v626_v40 = vpop.f32.mrf.mxu3 }
 0x1de   : > { %v627_v41 = vadd.f32 %v626_v40, %v577_v33 }
 0x1e0   : > { %v651_v42 = vadd.f32 %v627_v41, %v505_v39 }
 0x1e2   : > { %667 = vst [vmem:[%s1528_s28 + $0x50] sm:$0xff] %v651_v42 }
 0x1e5   : > { %v628_v44 = vpop.f32.mrf.mxu3  ;;  %v582_v46 = vpop.f32.mrf.mxu2 }
 0x1e6   : > { %v629_v45 = vadd.f32 %v628_v44, %v579_v38 }
 0x1e8   : > { %v652_v47 = vadd.f32 %v629_v45, %v506_v43 }
 0x1ea   : > { %668 = vst [vmem:[%s1528_s28 + $0x58] sm:$0xff] %v652_v47 }
 0x1ed   : > { %v631_v49 = vpop.f32.mrf.mxu3  ;;  %v584_v52 = vpop.f32.mrf.mxu2 }
 0x1ee   : > { %v632_v50 = vadd.f32 %v631_v49, %v582_v46 }
 0x1f0   : > { %v653_v51 = vadd.f32 %v632_v50, %v507_v48 }
 0x1f2   : > { %669 = vst [vmem:[%s1528_s28 + $0x60] sm:$0xff] %v653_v51 }
 0x1f5   : > { %v633_v54 = vpop.f32.mrf.mxu3  ;;  %v587_v57 = vpop.f32.mrf.mxu2 }
 0x1f6   : > { %v634_v55 = vadd.f32 %v633_v54, %v584_v52 }
 0x1f8   : > { %v654_v56 = vadd.f32 %v634_v55, %v508_v53 }
 0x1fa   : > { %670 = vst [vmem:[%s1528_s28 + $0x68] sm:$0xff] %v654_v56 }
 0x1fd   : > { %v636_v59 = vpop.f32.mrf.mxu3  ;;  %v589_v62 = vpop.f32.mrf.mxu2 }
 0x1fe   : > { %v637_v60 = vadd.f32 %v636_v59, %v587_v57 }
 0x200   : > { %v655_v61 = vadd.f32 %v637_v60, %v509_v58 }
 0x202   : > { %671 = vst [vmem:[%s1528_s28 + $0x70] sm:$0xff] %v655_v61 }
 0x205   : > { %v638_v0 = vpop.f32.mrf.mxu3 }
 0x206   : > { %v639_v1 = vadd.f32 %v638_v0, %v589_v62 }
 0x208   : > { %v656_v2 = vadd.f32 %v639_v1, %v510_v63 }
 0x20a   : > { %672 = vst [vmem:[%s1528_s28 + $0x78] sm:$0xff] %v656_v2 }
 0x20b   : > { %1239 = shalt.err (!%p1236_p9)
}
 0x20c   : > { %s1348_s1 = smov 128   ;;  %s1349_s28 = smov 8  }
 0x20d   : > { %985 = dma.vmem_to_hbm [thread:$0]  (%p1468_p12), %s706_s11, 2048, %s708_s12, %s679_s7, %s1348_s1, %s1348_s1, %s1349_s28  }
 0x20e PF: > { %p1003_p10 = scmp.ge.s32.totalorder %s1342_s25, 2  ;;  %s722_s10 = sand.u32 1, %s1302_s15  }
 0x20f   : > { %s723_s9 = scalar_lea.sflag [#allocation4], %s722_s10 }
 0x210   : > { %p996_p11 = pnand %p1003_p10, %p1480_p2 }
 0x212   : > { %p997_p13 = pneg %p996_p11 }
 0x214   : > { %1293 = dma.done.wait (%p997_p13), %s723_s9, 64  }
 0x215   : > { %1295 = vsyncadd (%p997_p13), %s723_s9, 4294967232  ;;  %s733_s20 = scalar_lea.sflag [#allocation9], %s722_s10 }
 0x216   : > { %1297 = dma.done.wait (%p997_p13), %s733_s20, 2048  }
 0x217   : > { %1299 = vsyncadd (%p997_p13), %s733_s20, 4294965248  ;;  %s27_s25 = sadd.s32 1, %s1342_s25   ;;  %s1733_s30 = sld [smem:[#allocation19_spill]] }
 0x218   : > { %p24_p0 = scmp.ge.s32.totalorder %s27_s25, 6   ;;  %s1734_s27 = sld [smem:[#allocation14_spill]] }
 0x219   : > { %s1735_s20 = sld [smem:[#allocation20_spill]]  ;;  %s1740_s15 = smov %s1306_s16 }
 0x21a   : > { %s1736_s21 = sld [smem:[#allocation15_spill]]  ;;  %s1741_s16 = smov %s1310_s17 }
 0x21b   : > { %s1737_s22 = sld [smem:[#allocation16_spill]]  ;;  %s1743_s18 = smov %s1318_s19 }
 0x21c   : > { %s1738_s23 = sld [smem:[#allocation17_spill]]  ;;  %26 = sbr.rel (!%p24_p0) target bundleno = 15 (0xf), region = 111 }
 0x21d   : > { %s1739_s24 = sld [smem:[#allocation18_spill]]  ;;  %s1742_s17 = smov %s1733_s30 }
 0x21e   : > { %s1744_s19 = smov %s1734_s27 }
 0x221   :  { %739 = vsyncpa [#allocation3], 1 }
 0x222   :  { %741 = vsyncpa [#allocation3 + $0x1], 1 }
 0x223   :  { %742 = vsyncpa [#allocation6], 1 }
 0x224   :  { %744 = vsyncpa [#allocation6 + $0x1], 1 }
 0x225   :  { %745 = vsyncpa [#allocation4], 1 }
 0x226   :  { %747 = vsyncpa [#allocation4 + $0x1], 1 }
 0x227   :  { %748 = vsyncpa [#allocation9], 1 }
 0x228   :  { %750 = vsyncpa [#allocation9 + $0x1], 1 }

</bundles_post_ra>
